<compile_context>
chip_gen: v7x
topology: tpu7x:2x2x1
jax: 0.10.0
libtpu: 0.0.40
codegen_flags: <defaults>
</compile_context>

<pallas_src>
import math

import jax
import jax.numpy as jnp
import numpy as np
from jax.experimental import pallas as pl
from jax.experimental.pallas import tpu as pltpu

LANE = 128


# ----------------------------- parameter setup ------------------------------

def get_freq_indices(method):
    assert method in ['top1', 'top2', 'top4', 'top8', 'top16', 'top32',
                      'bot1', 'bot2', 'bot4', 'bot8', 'bot16', 'bot32',
                      'low1', 'low2', 'low4', 'low8', 'low16', 'low32']
    num_freq = int(method[3:])
    if 'top' in method:
        all_x = [0, 0, 6, 0, 0, 1, 1, 4, 5, 1, 3, 0, 0, 0, 3, 2,
                 4, 6, 3, 5, 5, 2, 6, 5, 5, 3, 3, 4, 2, 2, 6, 1]
        all_y = [0, 1, 0, 5, 2, 0, 2, 0, 0, 6, 0, 4, 6, 3, 5, 2,
                 6, 3, 3, 3, 5, 1, 1, 2, 4, 2, 1, 1, 3, 0, 5, 3]
    elif 'low' in method:
        all_x = [0, 0, 1, 1, 0, 2, 2, 1, 2, 0, 3, 4, 0, 1, 3, 0,
                 1, 2, 3, 4, 5, 0, 1, 2, 3, 4, 5, 6, 1, 2, 3, 4]
        all_y = [0, 1, 0, 1, 2, 0, 1, 2, 2, 3, 0, 0, 4, 3, 1, 5,
                 4, 3, 2, 1, 0, 6, 5, 4, 3, 2, 1, 0, 6, 5, 4, 3]
    else:  # bot
        all_x = [6, 1, 3, 3, 2, 4, 1, 2, 4, 4, 5, 1, 4, 6, 2, 5,
                 6, 1, 6, 2, 2, 4, 3, 3, 5, 5, 6, 2, 5, 5, 3, 6]
        all_y = [6, 4, 4, 6, 6, 3, 1, 4, 4, 5, 6, 5, 2, 2, 5, 1,
                 4, 3, 5, 0, 3, 1, 1, 2, 4, 2, 1, 1, 5, 3, 3, 3]
    return all_x[:num_freq], all_y[:num_freq]


def _build_filter(pos, freq, POS):
    r = math.cos(math.pi * freq * (pos + 0.5) / POS) / math.sqrt(POS)
    return r if freq == 0 else r * math.sqrt(2)


def get_dct_filter(tile_x, tile_y, mapper_x, mapper_y, channel):
    dct = np.zeros((channel, tile_x, tile_y), dtype=np.float64)
    c_part = channel // len(mapper_x)
    for i, (u_x, v_y) in enumerate(zip(mapper_x, mapper_y)):
        for t_x in range(tile_x):
            for t_y in range(tile_y):
                dct[i * c_part:(i + 1) * c_part, t_x, t_y] = (
                    _build_filter(t_x, u_x, tile_x) * _build_filter(t_y, v_y, tile_y))
    return dct


def _adaptive_pool_matrix(h, w, out_h, out_w):
    """(out_h*out_w, h*w) matrix implementing torch adaptive_avg_pool2d."""
    P = np.zeros((out_h * out_w, h * w), dtype=np.float64)
    for i in range(out_h):
        h0 = (i * h) // out_h
        h1 = -(-((i + 1) * h) // out_h)
        for j in range(out_w):
            w0 = (j * w) // out_w
            w1 = -(-((j + 1) * w) // out_w)
            win = np.zeros((h, w), dtype=np.float64)
            win[h0:h1, w0:w1] = 1.0 / ((h1 - h0) * (w1 - w0))
            P[i * out_w + j] = win.reshape(-1)
    return P


def build_combined_weight(dct_np, dct_h, dct_w, h, w):
    """Fuse adaptive_avg_pool2d + DCT filter into one (C, hw_pad) weight.

    Both ops are linear over spatial positions, so
        y[c] = sum_hw x[c, hw] * Wc[c, hw]
    reproduces torch's pool-then-DCT exactly.  Padded lanes are explicit zeros.
    """
    channel = dct_np.shape[0]
    if (h, w) == (dct_h, dct_w):
        comb = dct_np.reshape(channel, h * w)
    else:
        P = _adaptive_pool_matrix(h, w, dct_h, dct_w)
        comb = dct_np.reshape(channel, dct_h * dct_w) @ P
    hw = h * w
    hw_pad = ((hw + LANE - 1) // LANE) * LANE
    out = np.zeros((channel, hw_pad), dtype=np.float32)
    out[:, :hw] = comb.astype(np.float32)
    return jnp.asarray(out)


# ------------------------------- Pallas kernel -------------------------------

def _make_msa_kernel(hw_valid):
    def msa_kernel(x_ref, wc_ref, w1_ref, w2_ref, o_ref):
        # x_ref/o_ref : (NB, C, HWp)  lane-padded activation block
        # wc_ref      : (C, HWp)      fused pool+DCT weight (zero in padding)
        # w1_ref      : (C//r, C)     first linear weight (PyTorch layout)
        # w2_ref      : (C, C//r)     second linear weight (PyTorch layout)
        x = x_ref[...]
        hwp = x.shape[-1]
        if hwp != hw_valid:
            # Lanes >= hw_valid are Pallas block padding (unspecified data);
            # zero them so the reduction is exact even if they hold NaN/Inf.
            lane = jax.lax.broadcasted_iota(jnp.int32, x.shape, 2)
            x_valid = jnp.where(lane < hw_valid, x, 0.0)
        else:
            x_valid = x

        # Fused adaptive-avg-pool + DCT pooling (VPU multiply + lane reduce).
        y = jnp.sum(x_valid * wc_ref[...][None, :, :], axis=-1)          # (NB, C)

        # Squeeze-excite MLP, batched over the NB rows of this block
        # (y @ W1^T, hid @ W2^T via dot_general: no explicit transpose).
        hid = jax.lax.dot_general(y, w1_ref[...], (((1,), (1,)), ((), ())),
                                  preferred_element_type=jnp.float32)    # (NB, C//r)
        hid = jnp.maximum(hid, 0.0)
        scale = jax.nn.sigmoid(
            jax.lax.dot_general(hid, w2_ref[...], (((1,), (1,)), ((), ())),
                                preferred_element_type=jnp.float32))     # (NB, C)

        # Channel re-weighting; padded lanes/rows are discarded on writeback.
        o_ref[...] = x * scale[:, :, None]

    return msa_kernel


def multi_spectral_attention(x, w_comb, w1, w2, *, batch_tile=None):
    n, c, h, w = x.shape
    hw = h * w
    hw_pad = w_comb.shape[-1]
    cr = w1.shape[0]
    assert w_comb.shape[0] == c and w1.shape == (cr, c) and w2.shape == (c, cr)

    x_flat = x.reshape(n, c, hw).astype(jnp.float32)

    if batch_tile is None:
        # x block + out block, double-buffered, kept under ~8 MiB of VMEM.
        per_elem = c * hw_pad * 4 * 4
        batch_tile = int(max(1, min(n, (8 << 20) // max(per_elem, 1))))
    grid = (pl.cdiv(n, batch_tile),)

    out_flat = pl.pallas_call(
        _make_msa_kernel(hw),
        out_shape=jax.ShapeDtypeStruct((n, c, hw), jnp.float32),
        grid=grid,
        in_specs=[
            # x: blocked over batch, full channels, lane-padded spatial width.
            pl.BlockSpec((batch_tile, c, hw_pad), lambda i: (i, 0, 0)),
            # Grid-invariant operands (constant index_map => fetched once).
            pl.BlockSpec((c, hw_pad), lambda i: (0, 0)),
            pl.BlockSpec((cr, c), lambda i: (0, 0)),
            pl.BlockSpec((c, cr), lambda i: (0, 0)),
        ],
        out_specs=pl.BlockSpec((batch_tile, c, hw_pad), lambda i: (i, 0, 0)),
        compiler_params=pltpu.CompilerParams(
            dimension_semantics=("parallel",)),
    )(x_flat, w_comb, w1, w2)

    return out_flat.reshape(n, c, h, w)


# --------------------------------- reference ---------------------------------

def adaptive_avg_pool2d(x, out_h, out_w):
    """Exact PyTorch adaptive_avg_pool2d semantics (NCHW). Reference-only."""
    n, c, h, w = x.shape
    rows = []
    for i in range(out_h):
        h0 = (i * h) // out_h
        h1 = -(-((i + 1) * h) // out_h)
        cols = []
        for j in range(out_w):
            w0 = (j * w) // out_w
            w1 = -(-((j + 1) * w) // out_w)
            cols.append(jnp.mean(x[:, :, h0:h1, w0:w1], axis=(2, 3)))
        rows.append(jnp.stack(cols, axis=-1))
    return jnp.stack(rows, axis=-2)


def msa_reference(x, dct_weight, w1, w2, dct_h, dct_w):
    n, c, h, w = x.shape
    xp = x if (h, w) == (dct_h, dct_w) else adaptive_avg_pool2d(x, dct_h, dct_w)
    y = jnp.sum(xp * dct_weight[None], axis=(2, 3))            # (N, C)
    y = jnp.maximum(y @ w1.T, 0.0)                              # (N, C//r)
    y = jax.nn.sigmoid(y @ w2.T)                                # (N, C)
    return x * y[:, :, None, None]


# ----------------------------------- main ------------------------------------

if __name__ == "__main__":
    # Module config: channel=16, dct_h=dct_w=7, reduction=4, freq_sel_method='top16'
    channel, dct_h, dct_w, reduction = 16, 7, 7, 4
    freq_sel_method = 'top16'
    N, H, W = 2, 14, 14

    mapper_x, mapper_y = get_freq_indices(freq_sel_method)
    mapper_x = [mx * (dct_h // 7) for mx in mapper_x]
    mapper_y = [my * (dct_w // 7) for my in mapper_y]

    dct_np = get_dct_filter(dct_h, dct_w, mapper_x, mapper_y, channel)
    w_comb = build_combined_weight(dct_np, dct_h, dct_w, H, W)      # (C, 256)
    dct_weight = jnp.asarray(dct_np.astype(np.float32))             # reference only

    key = jax.random.PRNGKey(0)
    k1, k2, kx = jax.random.split(key, 3)
    w1 = (jax.random.normal(k1, (channel // reduction, channel), jnp.float32)
          * (1.0 / math.sqrt(channel)))
    w2 = (jax.random.normal(k2, (channel, channel // reduction), jnp.float32)
          * (1.0 / math.sqrt(channel // reduction)))
    x = jax.random.normal(kx, (N, channel, H, W), jnp.float32)

    out = jax.block_until_ready(multi_spectral_attention(x, w_comb, w1, w2))

    ref = jax.block_until_ready(msa_reference(x, dct_weight, w1, w2, dct_h, dct_w))
    assert out.shape == x.shape and out.dtype == jnp.float32
    np.testing.assert_allclose(np.asarray(out), np.asarray(ref), rtol=1e-4, atol=1e-5)

    print("KERNEL_OK")
</pallas_src>

<mosaic_0001>
module attributes {stable_mosaic.version = 11 : i64} {
  func.func @msa_kernel(%arg0: i32, %arg1: memref<2x16x256xf32, #tpu.memory_space<vmem>>, %arg2: memref<16x256xf32, #tpu.memory_space<vmem>>, %arg3: memref<4x16xf32, #tpu.memory_space<vmem>>, %arg4: memref<16x4xf32, #tpu.memory_space<vmem>>, %arg5: memref<2x16x256xf32, #tpu.memory_space<vmem>>) attributes {dimension_semantics = [#tpu.dimension_semantics<parallel>], iteration_bounds = array<i64: 1>, scalar_prefetch = 0 : i64, scratch_operands = 0 : i64, tpu.core_type = #tpu.core_type<tc>, window_params = [{transform_indices = @transform_0, window_bounds = array<i64: 2, 16, 256>}, {pipeline_mode = #tpu.pipeline_mode<synchronous>, transform_indices = @transform_1, window_bounds = array<i64: 16, 256>}, {pipeline_mode = #tpu.pipeline_mode<synchronous>, transform_indices = @transform_2, window_bounds = array<i64: 4, 16>}, {pipeline_mode = #tpu.pipeline_mode<synchronous>, transform_indices = @transform_3, window_bounds = array<i64: 16, 4>}, {transform_indices = @transform_4, window_bounds = array<i64: 2, 16, 256>}]} {
    %c0 = arith.constant 0 : index
    %c0_0 = arith.constant 0 : index
    %c0_1 = arith.constant 0 : index
    %0 = vector.load %arg1[%c0, %c0_0, %c0_1] : memref<2x16x256xf32, #tpu.memory_space<vmem>>, vector<2x16x256xf32>
    %1 = tpu.iota {dimensions = array<i32: 2>} : vector<2x16x256xi32>
    %c196_i32 = arith.constant 196 : i32
    %2 = vector.broadcast %c196_i32 : i32 to vector<2x16x256xi32>
    %3 = arith.cmpi slt, %1, %2 : vector<2x16x256xi32>
    %cst = arith.constant 0.000000e+00 : f32
    %4 = vector.broadcast %cst : f32 to vector<2x16x256xf32>
    %5 = arith.select %3, %0, %4 : vector<2x16x256xi1>, vector<2x16x256xf32>
    %c0_2 = arith.constant 0 : index
    %c0_3 = arith.constant 0 : index
    %6 = vector.load %arg2[%c0_2, %c0_3] : memref<16x256xf32, #tpu.memory_space<vmem>>, vector<16x256xf32>
    %7 = vector.shape_cast %6 : vector<16x256xf32> to vector<1x16x256xf32>
    %8 = vector.broadcast %7 : vector<1x16x256xf32> to vector<2x16x256xf32>
    %9 = arith.mulf %5, %8 : vector<2x16x256xf32>
    %cst_4 = arith.constant dense<0.000000e+00> : vector<2x16xf32>
    %10 = vector.multi_reduction <add>, %9, %cst_4 [2] : vector<2x16x256xf32> to vector<2x16xf32>
    %c0_5 = arith.constant 0 : index
    %c0_6 = arith.constant 0 : index
    %11 = vector.load %arg3[%c0_5, %c0_6] : memref<4x16xf32, #tpu.memory_space<vmem>>, vector<4x16xf32>
    %cst_7 = arith.constant dense<0.000000e+00> : vector<2x4xf32>
    %12 = tpu.matmul %10, %11, %cst_7 {dimension_numbers = #tpu.dot_dimension_numbers<[1], [1], [0], [0], [0, 0, 1, 0], [], []>} : vector<2x16xf32>, vector<4x16xf32>, vector<2x4xf32> -> vector<2x4xf32>
    %cst_8 = arith.constant 0.000000e+00 : f32
    %13 = vector.broadcast %cst_8 : f32 to vector<2x4xf32>
    %14 = arith.maximumf %12, %13 : vector<2x4xf32>
    %c0_9 = arith.constant 0 : index
    %c0_10 = arith.constant 0 : index
    %15 = vector.load %arg4[%c0_9, %c0_10] : memref<16x4xf32, #tpu.memory_space<vmem>>, vector<16x4xf32>
    %cst_11 = arith.constant dense<0.000000e+00> : vector<2x16xf32>
    %16 = tpu.matmul %14, %15, %cst_11 {dimension_numbers = #tpu.dot_dimension_numbers<[1], [1], [0], [0], [0, 0, 1, 0], [], []>} : vector<2x4xf32>, vector<16x4xf32>, vector<2x16xf32> -> vector<2x16xf32>
    %17 = arith.negf %16 : vector<2x16xf32>
    %18 = math.exp %17 : vector<2x16xf32>
    %cst_12 = arith.constant 1.000000e+00 : f32
    %19 = vector.broadcast %cst_12 : f32 to vector<2x16xf32>
    %20 = arith.addf %19, %18 : vector<2x16xf32>
    %21 = arith.divf %19, %20 : vector<2x16xf32>
    %22 = vector.shape_cast %21 : vector<2x16xf32> to vector<2x16x1xf32>
    %23 = vector.broadcast %22 : vector<2x16x1xf32> to vector<2x16x256xf32>
    %24 = arith.mulf %0, %23 : vector<2x16x256xf32>
    %c0_13 = arith.constant 0 : index
    %c0_14 = arith.constant 0 : index
    %c0_15 = arith.constant 0 : index
    %25 = vector.load %arg5[%c0_13, %c0_14, %c0_15] : memref<2x16x256xf32, #tpu.memory_space<vmem>>, vector<2x16x256xf32>
    tpu.vector_store %arg5[%c0_13, %c0_14, %c0_15], %24 {strides = array<i32>} : memref<2x16x256xf32, #tpu.memory_space<vmem>>, vector<2x16x256xf32>,
    return
  }
  func.func @transform_0(%arg0: i32) -> (i32, i32, i32) {
    %c0_i32 = arith.constant 0 : i32
    %c0_i32_0 = arith.constant 0 : i32
    %c0_i32_1 = arith.constant 0 : i32
    return %arg0, %c0_i32, %c0_i32_0 : i32, i32, i32
  }
  func.func @transform_1(%arg0: i32) -> (i32, i32) {
    %c0_i32 = arith.constant 0 : i32
    %c0_i32_0 = arith.constant 0 : i32
    %c0_i32_1 = arith.constant 0 : i32
    return %c0_i32, %c0_i32_0 : i32, i32
  }
  func.func @transform_2(%arg0: i32) -> (i32, i32) {
    %c0_i32 = arith.constant 0 : i32
    %c0_i32_0 = arith.constant 0 : i32
    %c0_i32_1 = arith.constant 0 : i32
    return %c0_i32, %c0_i32_0 : i32, i32
  }
  func.func @transform_3(%arg0: i32) -> (i32, i32) {
    %c0_i32 = arith.constant 0 : i32
    %c0_i32_0 = arith.constant 0 : i32
    %c0_i32_1 = arith.constant 0 : i32
    return %c0_i32, %c0_i32_0 : i32, i32
  }
  func.func @transform_4(%arg0: i32) -> (i32, i32, i32) {
    %c0_i32 = arith.constant 0 : i32
    %c0_i32_0 = arith.constant 0 : i32
    %c0_i32_1 = arith.constant 0 : i32
    return %arg0, %c0_i32, %c0_i32_0 : i32, i32, i32
  }
}

</mosaic_0001>

<bundles_post_ra>
// kernel: tpu_custom_call.1
= control target key start
LH: loop header
LB: loop body
LE: loop exit
PB: predicated region body
PF: predicated region fallthrough
CT: control target
= control target key end

     0   :  { %9 = vsyncpa [#allocation3], 0  ;;  %s578_s0 = inlined_call_operand.hbm [shape: f32[2,16,196], index: 0, kind: input, shape index: {}]   ;;  %s579_s1 = inlined_call_operand.hbm [shape: f32[16,256], index: 1, kind: input, shape index: {}]   ;;  %s580_s2 = inlined_call_operand.vmem [shape: f32[4,16], index: 2, kind: input, shape index: {}]   ;;  %s581_s3 = inlined_call_operand.vmem [shape: f32[16,4], index: 3, kind: input, shape index: {}]   ;;  %s582_s4 = inlined_call_operand.hbm [shape: f32[2,16,196], index: 4, kind: output, shape index: {}]  }
   0x1   :  { %10 = vsyncpa [#allocation6], 0 }
   0x2   :  { %11 = vsyncpa [#allocation4], 0  ;;  %s450_s15 = smov [#allocation2]   ;;  %s378_s19 = scalar_lea.hbm %s578_s0, 1024 }
   0x3   :  { %s17_s16 = sshll.u32 %s450_s15, 4  ;;  %p379_p0 = scmp.ne.s32.totalorder %s578_s0, %s378_s19  ;;  %s18_s16 = int_to_ptr.vmem [resolvable:$true] %s17_s16 }
   0x4   :  { %p382_p1 = scmp.lt.u32.totalorder %s378_s19, %s578_s0 }
   0x6   :  { %p384_p2 = pnand %p382_p1, %p379_p0 }
   0x8   :  { %387 = shalt.err (!%p384_p2)
}
   0x9   :  { %s388_s24 = scalar_lea.vmem %s18_s16, 1024  ;;  %p393_p4 = scmp.lt.s32.totalorder %s18_s16, %s18_s16 }
   0xa   :  { %p389_p3 = scmp.ne.s32.totalorder %s18_s16, %s388_s24  ;;  %p394_p5 = scmp.lt.s32.totalorder %s388_s24, %s388_s24 }
   0xc   :  { %p395_p6 = por %p394_p5, %p393_p4 }
   0xe   :  { %p396_p7 = pnand %p395_p6, %p389_p3 }
  0x10   :  { %399 = shalt.err (!%p396_p7)
}
  0x11   :  { %s451_s25 = smov 256   ;;  %s452_s26 = smov 16  }
  0x12   :  { %23 = dma.hbm_to_vmem [thread:$0]  %s578_s0, 1024, %s18_s16, [#allocation3], %s451_s25, %s451_s25, %s452_s26  }
  0x13   :  { %s453_s29 = smov [#allocation5]   ;;  %s400_s7 = scalar_lea.hbm %s579_s1, 512 }
  0x14   :  { %s29_s30 = sshll.u32 %s453_s29, 4  ;;  %p401_p8 = scmp.ne.s32.totalorder %s579_s1, %s400_s7  ;;  %s30_s30 = int_to_ptr.vmem [resolvable:$true] %s29_s30 }
  0x15   :  { %p404_p9 = scmp.lt.u32.totalorder %s400_s7, %s579_s1 }
  0x17   :  { %p406_p10 = pnand %p404_p9, %p401_p8 }
  0x19   :  { %409 = shalt.err (!%p406_p10)
}
  0x1a   :  { %s410_s12 = scalar_lea.vmem %s30_s30, 512  ;;  %p415_p12 = scmp.lt.s32.totalorder %s30_s30, %s30_s30 }
  0x1b   :  { %p411_p11 = scmp.ne.s32.totalorder %s30_s30, %s410_s12  ;;  %p416_p13 = scmp.lt.s32.totalorder %s410_s12, %s410_s12 }
  0x1d   :  { %p417_p0 = por %p416_p13, %p415_p12 }
  0x1f   :  { %p418_p1 = pnand %p417_p0, %p411_p11 }
  0x21   :  { %421 = shalt.err (!%p418_p1)
}
  0x22   :  { %35 = dma.hbm_to_vmem [thread:$0]  %s579_s1, 512, %s30_s30, [#allocation6], %s451_s25, %s451_s25, %s452_s26  }
  0x23   :  { %444 = dma.done.wait [#allocation3], 1024  }
  0x24   :  { %445 = vsyncadd [#allocation3], 4294966272 }
  0x25   :  { %446 = dma.done.wait [#allocation6], 512  }
  0x26   :  { %447 = vsyncadd [#allocation6], 4294966784  ;;  %v54_v0 = vlaneseq  ;;  %v513_v3 = vld [vmem:[#allocation2 + $0x20] sm:$0xff]  ;;  %v515_v4 = vld [vmem:[#allocation2 + $0x28] sm:$0xff]  ;;  %v454_v31 = vmov 0.0   ;;  %vm118_vm1 = vcmask 130048  }
  0x27   :  { %v67_v5 = vld [vmem:[#allocation5] sm:$0xff]  ;;  %v68_v7 = vld [vmem:[#allocation5 + $0x8] sm:$0xff]  ;;  %v527_v14 = vld [vmem:[#allocation2 + $0x30] sm:$0xff]  ;;  %350 = vmatprep.subr.mxu0 %v454_v31  ;;  %vm455_vm2 = vmmov 0   ;;  %vm197_vm3 = vcmask 31744   ;;  %v456_v35 = vmov 0.0|0.0  }
  0x28   :  { %v55_v1 = vand.u32 127, %v54_v0  ;;  %v75_v8 = vmul.f32 %v67_v5, %v513_v3  ;;  %v520_v9 = vld [vmem:[#allocation2] sm:$0xff]  ;;  %v522_v10 = vld [vmem:[#allocation2 + $0x8] sm:$0xff]  ;;  %v529_v15 = vld [vmem:[#allocation2 + $0x38] sm:$0xff]  ;;  %352 = vmatprep.mubr.msk.f32.mxu0 %vm455_vm2, %v454_v31  ;;  %359 = vmatprep.mubr.msk.f32.mxu1 %vm455_vm2, %v454_v31  ;;  %v97_v37 = vshrl.u32 %v54_v0, 7  ;;  %vm105_vm5 = vcmask 130112  }
  0x29   :  { %v71_v13 = vmul.f32 %v67_v5, %v520_v9  ;;  %v69_v16 = vld [vmem:[#allocation5 + $0x10] sm:$0xff]  ;;  %v70_v19 = vld [vmem:[#allocation5 + $0x18] sm:$0xff]  ;;  %v91_v32 = vld [vmem:[%s580_s2] sm:$0xf]  ;;  %362 = vmatprep.subr.bf16.mxu1 %v456_v35  ;;  %vm116_vm6 = vcmask 1041409   ;;  %s457_s2 = smov [#allocation7]  }
  0x2a   :  { %v56_v2 = vadd.s32 128, %v55_v1  ;;  %v77_v20 = vmul.f32 %v69_v16, %v527_v14  ;;  %v534_v21 = vld [vmem:[#allocation2 + $0x10] sm:$0xff]  ;;  %v536_v22 = vld [vmem:[#allocation2 + $0x18] sm:$0xff]  ;;  %351 = vmatpush3.xpose.msk.msra.mxu0 %vm118_vm1, %v91_v32  ;;  %v195_v33 = vld [vmem:[%s581_s3] sm:$0xff]  ;;  %v100_v38 = vadd.s32 4294967288, %v55_v1  ;;  %v98_v40 = vsub.s32 %v55_v1, %v97_v37 }
  0x2b   :  { %v73_v26 = vmul.f32 %v69_v16, %v534_v21  ;;  %v196_v34 = vld [vmem:[%s581_s3 + $0x8] sm:$0xff]  ;;  %vm364_vm4 = vmpackc.low %vm197_vm3, %vm197_vm3  ;;  %v285_v60 = vsub.s32 0, %v97_v37  ;;  %v296_v63 = vsub.s32 1, %v97_v37  ;;  %s326_s3 = sshll.u32 %s457_s2, 4  ;;  %s327_s3 = int_to_ptr.vmem [resolvable:$true] %s326_s3 }
  0x2c   :  { %vm58_vm0 = vcmp.lt.s32.totalorder %v56_v2, 196  ;;  %v363_v36 = vpack.c.bf16 %v196_v34, %v195_v33  ;;  %v103_v42 = vsub.s32 %v100_v38, %v97_v37  ;;  %s422_s19 = scalar_lea.vmem %s327_s3, 1024  ;;  %p427_p3 = scmp.lt.s32.totalorder %s327_s3, %s327_s3 }
  0x2d   :  { %v64_v6 = vsel %vm58_vm0, %v515_v4, 0.0  ;;  %v60_v12 = vsel %vm58_vm0, %v522_v10, 0.0  ;;  %v66_v18 = vsel %vm58_vm0, %v529_v15, 0.0  ;;  %v62_v25 = vsel %vm58_vm0, %v536_v22, 0.0  ;;  %p423_p2 = scmp.ne.s32.totalorder %s327_s3, %s422_s19  ;;  %p428_p4 = scmp.lt.s32.totalorder %s422_s19, %s422_s19 }
  0x2e   :  { %v76_v11 = vmul.f32 %v68_v7, %v64_v6  ;;  %v72_v17 = vmul.f32 %v68_v7, %v60_v12  ;;  %v78_v24 = vmul.f32 %v70_v19, %v66_v18  ;;  %v74_v28 = vmul.f32 %v70_v19, %v62_v25  ;;  %365 = vmatpush3.bf16.xpose.msk.msra.mxu1 %vm364_vm4, %v363_v36 }
  0x2f   :  { %p429_p5 = por %p428_p4, %p427_p3 }
  0x30   :  { %v85_v23 = vadd.f32 %v76_v11, %v75_v8  ;;  %v79_v27 = vadd.f32 %v72_v17, %v71_v13  ;;  %v88_v29 = vadd.f32 %v78_v24, %v77_v20  ;;  %v82_v30 = vadd.f32 %v74_v28, %v73_v26 }
  0x31   :  { %p430_p6 = pnand %p429_p5, %p423_p2 }
  0x32   :  { %86 = vadd.xlane.f32.xlu1 %v85_v23  ;;  %80 = vadd.xlane.f32.xlu0 %v79_v27 }
  0x36   :  { %89 = vadd.xlane.f32.xlu1 %v88_v29  ;;  %83 = vadd.xlane.f32.xlu0 %v82_v30 }
  0xbf   :  { %v87_v39 = vpop.xlane.xlu1 %86  ;;  %v81_v41 = vpop.xlane.xlu0 %80 }
  0xc0   :  { %v110_v44 = vrot.slane %v87_v39, %v98_v40  ;;  %v99_v47 = vrot.slane %v81_v41, %v98_v40 }
  0xc3   :  { %v90_v43 = vpop.xlane.xlu1 %89  ;;  %v84_v46 = vpop.xlane.xlu0 %83 }
  0xc4   :  { %v114_v45 = vrot.slane %v90_v43, %v103_v42  ;;  %v104_v48 = vrot.slane %v84_v46, %v103_v42 }
  0xc6   :  { %v115_v49 = vsel %vm105_vm5, %v114_v45, %v110_v44  ;;  %v106_v50 = vsel %vm105_vm5, %v104_v48, %v99_v47 }
  0xc7   :  { %v117_v51 = vsel %vm116_vm6, %v115_v49, %v106_v50 }
  0xc8   :  { %353 = vmatmul.mubr.msk.f32.vlgmr.msra.gmra.mrb[0].mxu0 %vm118_vm1, %v117_v51 }
 0x19b   :  { %v190_v52 = vpop.f32.mrb[0].mxu0 }
 0x19c   :  { %v194_v53 = vmax.f32 %v190_v52, 0.0  ;;  %v354_v54 = vpop.f32.mrb[1].mxu0 }
 0x19e   :  { %360 = vmatmul.mubr.msk.f32.vlgmr.msra.gmra.mrb[0].mxu1 %vm197_vm3, %v194_v53 }
 0x271   :  { %v273_v55 = vpop.f32.mrb[0].mxu1 }
 0x272   :  { %v344_v56 = vmul.f32 -1.442695, %v273_v55  ;;  %v361_v57 = vpop.f32.mrb[1].mxu1 }
 0x274   :  { %374 = vpow2.f32 %v344_v56 }
 0x27e   :  { %v375_v58 = vpop.eup %374 }
 0x27f   :  { %v280_v59 = vadd.f32 1.0, %v375_v58 }
 0x281   :  { %376 = vrcp.f32 %v280_v59 }
 0x28b   :  { %v377_v61 = vpop.eup %376 }
 0x28c   :  { %v286_v62 = vrot.slane %v377_v61, %v285_v60  ;;  %v297_v0 = vrot.slane %v377_v61, %v296_v63 }
 0x28e   :  { %292 = vbcast.lane.b32.xlu1 %v286_v62, 264  ;;  %288 = vbcast.lane.b32.xlu0 %v286_v62, 256 }
 0x292   :  { %299 = vbcast.lane.b32.xlu1 %v297_v0, 256 }
 0x296   :  { %303 = vbcast.lane.b32.xlu1 %v297_v0, 264 }
 0x300   :  { %v293_v1 = vpop.permute.xlu1 %292  ;;  %v289_v2 = vpop.permute.xlu0 %288 }
 0x301   :  { %v307_v5 = vmul.f32 %v293_v1, %v534_v21  ;;  %v308_v6 = vmul.f32 %v293_v1, %v536_v22  ;;  %v305_v7 = vmul.f32 %v289_v2, %v520_v9  ;;  %v306_v8 = vmul.f32 %v289_v2, %v522_v10 }
 0x303   :  { %315 = vst [vmem:[#allocation7 + $0x10] sm:$0xff] %v307_v5  ;;  %316 = vst [vmem:[#allocation7 + $0x18] sm:$0xff] %v308_v6 }
 0x304   :  { %313 = vst [vmem:[#allocation7] sm:$0xff] %v305_v7  ;;  %314 = vst [vmem:[#allocation7 + $0x8] sm:$0xff] %v306_v8  ;;  %v300_v11 = vpop.permute.xlu1 %299 }
 0x305   :  { %v309_v12 = vmul.f32 %v300_v11, %v513_v3  ;;  %v310_v13 = vmul.f32 %v300_v11, %v515_v4 }
 0x307   :  { %317 = vst [vmem:[#allocation7 + $0x20] sm:$0xff] %v309_v12  ;;  %318 = vst [vmem:[#allocation7 + $0x28] sm:$0xff] %v310_v13 }
 0x308   :  { %v304_v16 = vpop.permute.xlu1 %303 }
 0x309   :  { %v311_v17 = vmul.f32 %v304_v16, %v527_v14  ;;  %v312_v9 = vmul.f32 %v304_v16, %v529_v15 }
 0x30b   :  { %319 = vst [vmem:[#allocation7 + $0x30] sm:$0xff] %v311_v17  ;;  %320 = vst [vmem:[#allocation7 + $0x38] sm:$0xff] %v312_v9 }
 0x30c   :  { %433 = shalt.err (!%p430_p6)
}
 0x30d   :  { %s434_s22 = scalar_lea.hbm %s582_s4, 1024 }
 0x30e   :  { %p435_p7 = scmp.ne.s32.totalorder %s582_s4, %s434_s22  ;;  %p438_p8 = scmp.lt.u32.totalorder %s434_s22, %s582_s4 }
 0x310   :  { %p440_p9 = pnand %p438_p8, %p435_p7 }
 0x312   :  { %443 = shalt.err (!%p440_p9)
}
 0x313   :  { %332 = dma.vmem_to_hbm [thread:$0]  %s327_s3, 1024, %s582_s4, [#allocation4], %s451_s25, %s451_s25, %s452_s26  }
 0x314   :  { %448 = dma.done.wait [#allocation4], 1024  }
 0x315   :  { %449 = vsyncadd [#allocation4], 4294966272 }
 0x316   :  { %336 = vsyncpa [#allocation3], 1 }
 0x317   :  { %337 = vsyncpa [#allocation6], 1 }
 0x318   :  { %338 = vsyncpa [#allocation4], 1 }

</bundles_post_ra>
